<compile_context>
chip_gen: v7x
topology: tpu7x:2x2x1
jax: 0.10.0
libtpu: 0.0.40
codegen_flags: <defaults>
</compile_context>

<pallas_src>
from functools import partial

import numpy as np
import jax
import jax.numpy as jnp
from jax.experimental import pallas as pl
from jax.experimental.pallas import tpu as pltpu


def _cbr_kernel(x_ref, w_ref, p_ref, o_ref, *, N, H, W, Cout, KH, eps):
    """Fused conv(KHxKH, SAME, no bias) + BatchNorm2d(batch stats) + PReLU.

    x_ref : (N*H, W*Cin)        lane-dense input  (lane = w*Cin + ci)
    w_ref : (KH*W*Cin, W*Cout)  packed banded conv weights (kw taps + W-padding
                                folded in, KH taps stacked along the K axis)
    p_ref : (3, W*Cout)         rows: [gamma, beta, alpha], tiled to lanes
    o_ref : (N*H, W*Cout)       lane-dense output (lane = w*Cout + co)
    """
    NH, WCin = x_ref.shape
    WCout = o_ref.shape[-1]
    pad = (KH - 1) // 2

    x2d = x_ref[...]
    # Row -> h (position inside its sample), used to mask sample-boundary rows.
    h_idx = jax.lax.broadcasted_iota(jnp.int32, (N, H, WCin), 1).reshape(NH, WCin)

    # Build the KH H-shifted strips as register values (no VMEM scratch, no
    # masked stores) and pack them side-by-side on the lane axis.
    pieces = []
    for kh in range(KH):
        d = kh - pad  # strip kh holds x[n, h + d]
        if d == 0:
            pieces.append(x2d)
        elif d < 0:
            sh = jnp.concatenate(
                [jnp.zeros((-d, WCin), x2d.dtype), x2d[:NH + d, :]], axis=0)
            pieces.append(jnp.where(h_idx < -d, 0.0, sh))
        else:
            sh = jnp.concatenate(
                [x2d[d:, :], jnp.zeros((d, WCin), x2d.dtype)], axis=0)
            pieces.append(jnp.where(h_idx >= H - d, 0.0, sh))
    lhs = jnp.concatenate(pieces, axis=-1)             # (N*H, KH*W*Cin)

    # The whole convolution = one MXU matmul with f32 accumulation.
    acc = jax.lax.dot_general(lhs, w_ref[...], (((1,), (0,)), ((), ())),
                              preferred_element_type=jnp.float32)  # (N*H, W*Cout)

    # BatchNorm2d training-mode batch statistics, single pass.  The per-channel
    # reduction over the W positions (lane = w*Cout + co) is done with log2(W)
    # stride-Cout cyclic roll-adds: afterwards every lane holds its channel's
    # total, already replicated across w -> no gather/scatter matmuls and no
    # broadcast back to the lane layout.
    s1 = jnp.sum(acc, axis=0, keepdims=True)           # (1, W*Cout)
    s2 = jnp.sum(acc * acc, axis=0, keepdims=True)     # (1, W*Cout)
    st = jnp.concatenate([s1, s2], axis=0)             # (2, W*Cout)
    shift = Cout
    while shift < WCout:                               # unrolled at trace time
        st = st + pltpu.roll(st, shift=shift, axis=1)
        shift *= 2

    inv_cnt = 1.0 / float(N * H * W)
    mean_l = st[0:1, :] * inv_cnt
    ex2_l = st[1:2, :] * inv_cnt
    # NOTE: one-pass E[x^2]-E[x]^2 variance (clamped at 0); fine in f32 with
    # eps=1e-3 at these magnitudes.
    var_l = jnp.maximum(ex2_l - mean_l * mean_l, 0.0)
    inv_l = jax.lax.rsqrt(var_l + eps)

    gamma_l = p_ref[0:1, :]
    beta_l = p_ref[1:2, :]
    alpha_l = p_ref[2:3, :]

    # Fold gamma into one per-lane scale/shift -> single fused FMA epilogue.
    scale_l = inv_l * gamma_l
    shift_l = beta_l - mean_l * scale_l
    y = acc * scale_l + shift_l
    o_ref[...] = jnp.where(y > 0.0, y, y * alpha_l).astype(o_ref.dtype)


def cbr_prepare(w_hwio, gamma, beta, alpha, *, H, W, stride=1, dilated=1, eps=1e-3):
    """One-time (init-time) preprocessing.  Nothing here runs per forward call."""
    if stride != 1 or dilated != 1:
        # TODO(synk): stride>1 / dilation>1 main paths are not implemented in the
        #             Pallas kernel (chosen config uses stride=1, dilated=1).
        raise NotImplementedError("Pallas CBR kernel supports stride=1, dilated=1 only")
    w_np = np.asarray(w_hwio, np.float32)
    KH, KW, Cin, Cout = w_np.shape
    if W & (W - 1):
        # TODO(synk): non power-of-two W needs a different per-channel reduction
        #             (the stride-Cout roll-reduce assumes W is a power of two).
        raise NotImplementedError("W must be a power of two")
    pad = (KW - 1) // 2

    # Fold the kw taps and the SAME padding along W into per-kh banded matrices
    # (W*Cin, W*Cout), then stack the KH taps along the contraction axis so the
    # whole conv becomes one (N*H, KH*W*Cin) @ (KH*W*Cin, W*Cout) matmul.
    # Pure 0/1 selection -> exact.
    t = np.zeros((KW, W, W), np.float32)
    for kw in range(KW):
        for wo in range(W):
            wi = wo + kw - pad
            if 0 <= wi < W:
                t[kw, wo, wi] = 1.0
    wpk = np.einsum("xwv,kxio->kviwo", t, w_np).reshape(KH * W * Cin, W * Cout)

    # gamma / beta / alpha pre-tiled to the lane layout and packed as one operand.
    pbn = np.stack([np.tile(np.asarray(gamma, np.float32), W),
                    np.tile(np.asarray(beta, np.float32), W),
                    np.tile(np.asarray(alpha, np.float32), W)], axis=0)

    # TODO(synk): the banded weight is O(KH*W^2*Cin*Cout); for large spatial W it
    #             must be W-tiled (and bf16 on v6e/v7x) before it hits VMEM limits.
    return dict(wpk=jnp.asarray(wpk), pbn=jnp.asarray(pbn),
                meta=dict(H=H, W=W, Cin=Cin, Cout=Cout, KH=KH, eps=eps))


def cbr_apply_lane(x_lane, wpk, pbn, *, N, H, W, Cout, KH, eps):
    """Hot path: x_lane is (N*H, W*Cin) f32 lane-dense; returns (N*H, W*Cout).
    Keep activations in this layout between layers to avoid NCHW round trips."""
    return pl.pallas_call(
        partial(_cbr_kernel, N=N, H=H, W=W, Cout=Cout, KH=KH, eps=eps),
        out_shape=jax.ShapeDtypeStruct((N * H, W * Cout), jnp.float32),
        # Single invocation (no grid): everything fits easily in VMEM and the
        # kernel is launch-overhead bound at ~0.6 MFLOP, so extra grid steps or
        # buffering would only add fixed per-step cost.
        # TODO(synk): for non-toy shapes add a 'parallel' row-tile grid axis with
        #             a two-pass BN reduction so both v7x TensorCores contribute.
    )(x_lane, wpk, pbn)


def nchw_to_lane(x_nchw):
    N, C, H, W = x_nchw.shape
    return jnp.transpose(x_nchw, (0, 2, 3, 1)).reshape(N * H, W * C)


def lane_to_nchw(y_lane, N, H, W, C):
    return jnp.transpose(y_lane.reshape(N, H, W, C), (0, 3, 1, 2))


def cbr_forward_nchw(x_nchw, prep):
    """NCHW-interface convenience wrapper (matches the PyTorch module interface).
    For chained layers prefer cbr_apply_lane and stay in the lane-dense layout."""
    m = prep["meta"]
    N, Cin, H, W = x_nchw.shape
    x_lane = nchw_to_lane(x_nchw.astype(jnp.float32))
    y = cbr_apply_lane(x_lane, prep["wpk"], prep["pbn"], N=N, H=H, W=W,
                       Cout=m["Cout"], KH=m["KH"], eps=m["eps"])
    return lane_to_nchw(y, N, H, W, m["Cout"])


def reference_forward(x_nchw, w_hwio, gamma, beta, alpha, eps=1e-3):
    """Plain-JAX reference: conv(SAME, no bias) -> BN(training stats) -> PReLU."""
    x = jnp.transpose(x_nchw, (0, 2, 3, 1))
    y = jax.lax.conv_general_dilated(x, w_hwio, window_strides=(1, 1),
                                     padding="SAME",
                                     dimension_numbers=("NHWC", "HWIO", "NHWC"))
    mean = jnp.mean(y, axis=(0, 1, 2), keepdims=True)
    var = jnp.mean((y - mean) ** 2, axis=(0, 1, 2), keepdims=True)
    y = (y - mean) / jnp.sqrt(var + eps)
    y = y * gamma.reshape(1, 1, 1, -1) + beta.reshape(1, 1, 1, -1)
    y = jnp.where(y > 0, y, alpha.reshape(1, 1, 1, -1) * y)
    return jnp.transpose(y, (0, 3, 1, 2))


if __name__ == "__main__":
    # Shapes consistent with the module: batch=2, nIn=4, nOut=8, kSize=3,
    # stride=1, dilated=1, spatial=16.
    N, Cin, Cout, H, W, K = 2, 4, 8, 16, 16, 3

    key = jax.random.PRNGKey(0)
    kx, kw = jax.random.split(key)
    x = jax.random.normal(kx, (N, Cin, H, W), dtype=jnp.float32)
    w = 0.1 * jax.random.normal(kw, (K, K, Cin, Cout), dtype=jnp.float32)  # HWIO
    gamma = jnp.ones((Cout,), jnp.float32)        # BN default init
    beta = jnp.zeros((Cout,), jnp.float32)
    alpha = jnp.full((Cout,), 0.25, jnp.float32)  # PReLU default slope

    # Init-time work (banded weights + lane-tiled params), done once.
    prep = cbr_prepare(w, gamma, beta, alpha, H=H, W=W)

    # Hot path: lane-dense in / lane-dense out; layout conversion stays outside.
    run = jax.jit(partial(cbr_apply_lane, N=N, H=H, W=W, Cout=Cout, KH=K, eps=1e-3))
    x_lane = nchw_to_lane(x)
    out_lane = jax.block_until_ready(run(x_lane, prep["wpk"], prep["pbn"]))
    out = lane_to_nchw(out_lane, N, H, W, Cout)

    ref = jax.block_until_ready(reference_forward(x, w, gamma, beta, alpha))

    assert out.shape == (N, Cout, H, W), out.shape
    err = float(jnp.max(jnp.abs(out - ref)))
    assert jnp.allclose(out, ref, atol=1e-4, rtol=1e-4), err
    print("KERNEL_OK")
</pallas_src>

<mosaic_0001>
module attributes {stable_mosaic.version = 11 : i64} {
  func.func @_cbr_kernel(%arg0: memref<32x64xf32, #tpu.memory_space<vmem>>, %arg1: memref<192x128xf32, #tpu.memory_space<vmem>>, %arg2: memref<3x128xf32, #tpu.memory_space<vmem>>, %arg3: memref<32x128xf32, #tpu.memory_space<vmem>>) attributes {dimension_semantics = [], scalar_prefetch = 0 : i64, scratch_operands = 0 : i64, tpu.core_type = #tpu.core_type<tc>} {
    %c0 = arith.constant 0 : index
    %c0_0 = arith.constant 0 : index
    %0 = vector.load %arg0[%c0, %c0_0] : memref<32x64xf32, #tpu.memory_space<vmem>>, vector<32x64xf32>
    %1 = tpu.iota {dimensions = array<i32: 1>} : vector<2x16x64xi32>
    %2 = vector.shape_cast %1 : vector<2x16x64xi32> to vector<32x64xi32>
    %cst = arith.constant 0.000000e+00 : f32
    %3 = vector.broadcast %cst : f32 to vector<1x64xf32>
    %4 = vector.extract_strided_slice %0 {offsets = [0, 0], sizes = [31, 64], strides = [1, 1]} : vector<32x64xf32> to vector<31x64xf32>
    %5 = tpu.concatenate %3, %4 in 0 : vector<1x64xf32>, vector<31x64xf32> -> vector<32x64xf32>
    %c1_i32 = arith.constant 1 : i32
    %6 = vector.broadcast %c1_i32 : i32 to vector<32x64xi32>
    %7 = arith.cmpi slt, %2, %6 : vector<32x64xi32>
    %cst_1 = arith.constant 0.000000e+00 : f32
    %8 = vector.broadcast %cst_1 : f32 to vector<32x64xf32>
    %9 = arith.select %7, %8, %5 : vector<32x64xi1>, vector<32x64xf32>
    %10 = vector.extract_strided_slice %0 {offsets = [1, 0], sizes = [31, 64], strides = [1, 1]} : vector<32x64xf32> to vector<31x64xf32>
    %cst_2 = arith.constant 0.000000e+00 : f32
    %11 = vector.broadcast %cst_2 : f32 to vector<1x64xf32>
    %12 = tpu.concatenate %10, %11 in 0 : vector<31x64xf32>, vector<1x64xf32> -> vector<32x64xf32>
    %c15_i32 = arith.constant 15 : i32
    %13 = vector.broadcast %c15_i32 : i32 to vector<32x64xi32>
    %14 = arith.cmpi sge, %2, %13 : vector<32x64xi32>
    %cst_3 = arith.constant 0.000000e+00 : f32
    %15 = vector.broadcast %cst_3 : f32 to vector<32x64xf32>
    %16 = arith.select %14, %15, %12 : vector<32x64xi1>, vector<32x64xf32>
    %17 = tpu.concatenate %9, %0, %16 in 1 : vector<32x64xf32>, vector<32x64xf32>, vector<32x64xf32> -> vector<32x192xf32>
    %c0_4 = arith.constant 0 : index
    %c0_5 = arith.constant 0 : index
    %18 = vector.load %arg1[%c0_4, %c0_5] : memref<192x128xf32, #tpu.memory_space<vmem>>, vector<192x128xf32>
    %cst_6 = arith.constant dense<0.000000e+00> : vector<32x128xf32>
    %19 = tpu.matmul %17, %18, %cst_6 {dimension_numbers = #tpu.dot_dimension_numbers<[1], [0], [0], [1], [0, 0, 1, 1], [], []>} : vector<32x192xf32>, vector<192x128xf32>, vector<32x128xf32> -> vector<32x128xf32>
    %cst_7 = arith.constant dense<0.000000e+00> : vector<128xf32>
    %20 = vector.multi_reduction <add>, %19, %cst_7 [0] : vector<32x128xf32> to vector<128xf32>
    %21 = vector.shape_cast %20 : vector<128xf32> to vector<1x128xf32>
    %22 = arith.mulf %19, %19 : vector<32x128xf32>
    %cst_8 = arith.constant dense<0.000000e+00> : vector<128xf32>
    %23 = vector.multi_reduction <add>, %22, %cst_8 [0] : vector<32x128xf32> to vector<128xf32>
    %24 = vector.shape_cast %23 : vector<128xf32> to vector<1x128xf32>
    %25 = tpu.concatenate %21, %24 in 0 : vector<1x128xf32>, vector<1x128xf32> -> vector<2x128xf32>
    %c8_i32 = arith.constant 8 : i32
    %26 = tpu.dynamic_rotate %25 by %c8_i32 dim 1 : vector<2x128xf32>, i32 -> vector<2x128xf32>
    %27 = arith.addf %25, %26 : vector<2x128xf32>
    %c16_i32 = arith.constant 16 : i32
    %28 = tpu.dynamic_rotate %27 by %c16_i32 dim 1 : vector<2x128xf32>, i32 -> vector<2x128xf32>
    %29 = arith.addf %27, %28 : vector<2x128xf32>
    %c32_i32 = arith.constant 32 : i32
    %30 = tpu.dynamic_rotate %29 by %c32_i32 dim 1 : vector<2x128xf32>, i32 -> vector<2x128xf32>
    %31 = arith.addf %29, %30 : vector<2x128xf32>
    %c64_i32 = arith.constant 64 : i32
    %32 = tpu.dynamic_rotate %31 by %c64_i32 dim 1 : vector<2x128xf32>, i32 -> vector<2x128xf32>
    %33 = arith.addf %31, %32 : vector<2x128xf32>
    %34 = vector.extract_strided_slice %33 {offsets = [0, 0], sizes = [1, 128], strides = [1, 1]} : vector<2x128xf32> to vector<1x128xf32>
    %cst_9 = arith.constant 0.001953125 : f32
    %35 = vector.broadcast %cst_9 : f32 to vector<1x128xf32>
    %36 = arith.mulf %34, %35 : vector<1x128xf32>
    %37 = vector.extract_strided_slice %33 {offsets = [1, 0], sizes = [1, 128], strides = [1, 1]} : vector<2x128xf32> to vector<1x128xf32>
    %cst_10 = arith.constant 0.001953125 : f32
    %38 = vector.broadcast %cst_10 : f32 to vector<1x128xf32>
    %39 = arith.mulf %37, %38 : vector<1x128xf32>
    %40 = arith.mulf %36, %36 : vector<1x128xf32>
    %41 = arith.subf %39, %40 : vector<1x128xf32>
    %cst_11 = arith.constant 0.000000e+00 : f32
    %42 = vector.broadcast %cst_11 : f32 to vector<1x128xf32>
    %43 = arith.maximumf %41, %42 : vector<1x128xf32>
    %cst_12 = arith.constant 1.000000e-03 : f32
    %44 = vector.broadcast %cst_12 : f32 to vector<1x128xf32>
    %45 = arith.addf %43, %44 : vector<1x128xf32>
    %46 = math.rsqrt %45 : vector<1x128xf32>
    %c0_13 = arith.constant 0 : index
    %c0_14 = arith.constant 0 : index
    %47 = vector.load %arg2[%c0_13, %c0_14] : memref<3x128xf32, #tpu.memory_space<vmem>>, vector<1x128xf32>
    %c1 = arith.constant 1 : index
    %c0_15 = arith.constant 0 : index
    %48 = vector.load %arg2[%c1, %c0_15] : memref<3x128xf32, #tpu.memory_space<vmem>>, vector<1x128xf32>
    %c2 = arith.constant 2 : index
    %c0_16 = arith.constant 0 : index
    %49 = vector.load %arg2[%c2, %c0_16] : memref<3x128xf32, #tpu.memory_space<vmem>>, vector<1x128xf32>
    %50 = arith.mulf %46, %47 : vector<1x128xf32>
    %51 = arith.mulf %36, %50 : vector<1x128xf32>
    %52 = arith.subf %48, %51 : vector<1x128xf32>
    %53 = vector.broadcast %50 : vector<1x128xf32> to vector<32x128xf32>
    %54 = arith.mulf %19, %53 : vector<32x128xf32>
    %55 = vector.broadcast %52 : vector<1x128xf32> to vector<32x128xf32>
    %56 = arith.addf %54, %55 : vector<32x128xf32>
    %cst_17 = arith.constant 0.000000e+00 : f32
    %57 = vector.broadcast %cst_17 : f32 to vector<32x128xf32>
    %58 = arith.cmpf ogt, %56, %57 : vector<32x128xf32>
    %59 = vector.broadcast %49 : vector<1x128xf32> to vector<32x128xf32>
    %60 = arith.mulf %56, %59 : vector<32x128xf32>
    %61 = arith.select %58, %56, %60 : vector<32x128xi1>, vector<32x128xf32>
    %c0_18 = arith.constant 0 : index
    %c0_19 = arith.constant 0 : index
    %62 = vector.load %arg3[%c0_18, %c0_19] : memref<32x128xf32, #tpu.memory_space<vmem>>, vector<32x128xf32>
    tpu.vector_store %arg3[%c0_18, %c0_19], %61 {strides = array<i32>} : memref<32x128xf32, #tpu.memory_space<vmem>>, vector<32x128xf32>,
    return
  }
}

</mosaic_0001>

<bundles_post_ra>
// kernel: cbr_apply_lane.1
= control target key start
LH: loop header
LB: loop body
LE: loop exit
PB: predicated region body
PF: predicated region fallthrough
CT: control target
= control target key end

     0   :  { %8 = vsyncpa [#allocation3], 0  ;;  %s670_s0 = inlined_call_operand.hbm [shape: f32[32,64], index: 0, kind: input, shape index: {}]   ;;  %s671_s1 = inlined_call_operand.hbm [shape: f32[192,128], index: 1, kind: input, shape index: {}]   ;;  %s672_s2 = inlined_call_operand.vmem [shape: f32[3,128], index: 2, kind: input, shape index: {}]   ;;  %s673_s3 = inlined_call_operand.hbm [shape: f32[32,128], index: 3, kind: output, shape index: {}]  }
   0x1   :  { %9 = vsyncpa [#allocation6], 0 }
   0x2   :  { %10 = vsyncpa [#allocation4], 0  ;;  %s493_s12 = smov [#allocation2]   ;;  %s421_s16 = scalar_lea.hbm %s670_s0, 512 }
   0x3   :  { %s16_s13 = sshll.u32 %s493_s12, 4  ;;  %p422_p0 = scmp.ne.s32.totalorder %s670_s0, %s421_s16  ;;  %s17_s13 = int_to_ptr.vmem [resolvable:$true] %s16_s13 }
   0x4   :  { %p425_p1 = scmp.lt.u32.totalorder %s421_s16, %s670_s0 }
   0x6   :  { %p427_p2 = pnand %p425_p1, %p422_p0 }
   0x8   :  { %430 = shalt.err (!%p427_p2)
}
   0x9   :  { %s431_s21 = scalar_lea.vmem %s17_s13, 512  ;;  %p436_p4 = scmp.lt.s32.totalorder %s17_s13, %s17_s13 }
   0xa   :  { %p432_p3 = scmp.ne.s32.totalorder %s17_s13, %s431_s21  ;;  %p437_p5 = scmp.lt.s32.totalorder %s431_s21, %s431_s21 }
   0xc   :  { %p438_p6 = por %p437_p5, %p436_p4 }
   0xe   :  { %p439_p7 = pnand %p438_p6, %p432_p3 }
  0x10   :  { %442 = shalt.err (!%p439_p7)
}
  0x11   :  { %s494_s22 = smov 128   ;;  %s495_s23 = smov 8  }
  0x12   :  { %22 = dma.hbm_to_vmem [thread:$0]  %s670_s0, 512, %s17_s13, [#allocation3], %s494_s22, %s494_s22, %s495_s23  }
  0x13   :  { %s496_s26 = smov [#allocation5]   ;;  %s443_s30 = scalar_lea.hbm %s671_s1, 3072 }
  0x14   :  { %s28_s27 = sshll.u32 %s496_s26, 4  ;;  %p444_p8 = scmp.ne.s32.totalorder %s671_s1, %s443_s30  ;;  %s29_s27 = int_to_ptr.vmem [resolvable:$true] %s28_s27 }
  0x15   :  { %p447_p9 = scmp.lt.u32.totalorder %s443_s30, %s671_s1 }
  0x17   :  { %p449_p10 = pnand %p447_p9, %p444_p8 }
  0x19   :  { %452 = shalt.err (!%p449_p10)
}
  0x1a   :  { %s453_s8 = scalar_lea.vmem %s29_s27, 3072  ;;  %p458_p12 = scmp.lt.s32.totalorder %s29_s27, %s29_s27 }
  0x1b   :  { %p454_p11 = scmp.ne.s32.totalorder %s29_s27, %s453_s8  ;;  %p459_p13 = scmp.lt.s32.totalorder %s453_s8, %s453_s8 }
  0x1d   :  { %p460_p0 = por %p459_p13, %p458_p12 }
  0x1f   :  { %p461_p1 = pnand %p460_p0, %p454_p11 }
  0x21   :  { %464 = shalt.err (!%p461_p1)
}
  0x22   :  { %34 = dma.hbm_to_vmem [thread:$0]  %s671_s1, 3072, %s29_s27, [#allocation6], %s494_s22, %s494_s22, %s495_s23  }
  0x23   :  { %487 = dma.done.wait [#allocation3], 512  }
  0x24   :  { %488 = vsyncadd [#allocation3], 4294966784 }
  0x25   :  { %489 = dma.done.wait [#allocation6], 3072  }
  0x26   :  { %490 = vsyncadd [#allocation6], 4294964224  ;;  %v497_v0 = vmov 0.0|0.0   ;;  %v554_v1 = vld [vmem:[#allocation2] sm:$0xff]  ;;  %v44_v2 = vld [vmem:[#allocation2 + $0x8] sm:$0xff]  ;;  %s498_s10 = smov 64   ;;  %v47_v57 = vlaneseq }
  0x27   :  { %345 = vmatprep.subr.bf16.mxu0 %v497_v0  ;;  %381 = vmatprep.subr.bf16.mxu1 %v497_v0  ;;  %v45_v3 = vld [vmem:[#allocation2 + $0x10] sm:$0xff]  ;;  %v74_v4 = vrot.slane %v554_v1, 1  ;;  %v46_v6 = vld [vmem:[#allocation2 + $0x18] sm:$0xff]  ;;  %v109_v7 = vld [vmem:[#allocation5] sm:$0xff]  ;;  %vm73_vm0 = vcmask 1046528   ;;  %v75_v14 = vrot.slane %v44_v2, 1 }
  0x28   :  { %92 = vrot.lane.b32.xlu0 %v554_v1, %s498_s10  ;;  %v77_v5 = vrot.slane %v45_v3, 1  ;;  %v58_v8 = vrot.slane %v45_v3, 7  ;;  %v414_v9 = vpack.i.bf16 %v45_v3, %v44_v2  ;;  %98 = vrot.lane.b32.xlu1 %v46_v6, %s498_s10  ;;  %v79_v10 = vrot.slane %v46_v6, 1  ;;  %v110_v11 = vld [vmem:[#allocation5 + $0x8] sm:$0xff]  ;;  %v111_v12 = vld [vmem:[#allocation5 + $0x10] sm:$0xff]  ;;  %v112_v13 = vld [vmem:[#allocation5 + $0x18] sm:$0xff] }
  0x29   :  { %v346_v15 = vpack.c.bf16 %v110_v11, %v109_v7  ;;  %vm104_vm1 = vcmask 523264   ;;  %v56_v16 = vrot.slane %v44_v2, 7  ;;  %v55_v17 = vrot.slane %v554_v1, 7  ;;  %v113_v23 = vld [vmem:[#allocation5 + $0x20] sm:$0xff]  ;;  %v114_v24 = vld [vmem:[#allocation5 + $0x28] sm:$0xff]  ;;  %v115_v30 = vld [vmem:[#allocation5 + $0x30] sm:$0xff] }
  0x2a   :  { %v60_v18 = vrot.slane %v46_v6, 7  ;;  %v76_v19 = vsel %vm73_vm0, %v74_v4, %v75_v14  ;;  %v563_v20 = vsel %vm73_vm0, %v75_v14, %v77_v5  ;;  %v349_v21 = vpack.c.bf16 %v112_v13, %v111_v12  ;;  %v116_v31 = vld [vmem:[#allocation5 + $0x38] sm:$0xff]  ;;  %v117_v33 = vld [vmem:[#allocation5 + $0x40] sm:$0xff]  ;;  %v118_v34 = vld [vmem:[#allocation5 + $0x48] sm:$0xff]  ;;  %s499_s1 = smov 16   ;;  %s500_s11 = smov 32  }
  0x2b   :  { %347 = vmatpush1.bf16.msra.mxu0 %v346_v15  ;;  %vm54_vm2 = vcmask 1040384   ;;  %v80_v22 = vsel %vm73_vm0, %v77_v5, %v79_v10  ;;  %393 = vmatpush1.bf16.msra.mxu1 %v346_v15  ;;  %v577_v27 = vsel %vm73_vm0, %v79_v10, 0.0  ;;  %v352_v29 = vpack.c.bf16 %v114_v24, %v113_v23  ;;  %v119_v36 = vld [vmem:[#allocation5 + $0x50] sm:$0xff]  ;;  %v120_v37 = vld [vmem:[#allocation5 + $0x58] sm:$0xff]  ;;  %v121_v39 = vld [vmem:[#allocation5 + $0x60] sm:$0xff]  ;;  %s501_s18 = smov [#allocation7]  }
  0x2c   :  { %415 = vrot.lane.b32.xlu0 %v414_v9, %s498_s10  ;;  %348 = vmatprep.subr.bf16.mxu0 %v497_v0  ;;  %v571_v25 = vsel %vm54_vm2, %v55_v17, %v56_v16  ;;  %v574_v26 = vsel %vm54_vm2, %v56_v16, %v58_v8  ;;  %v583_v28 = vsel %vm54_vm2, %v58_v8, %v60_v18  ;;  %v122_v40 = vld [vmem:[#allocation5 + $0x68] sm:$0xff]  ;;  %v123_v42 = vld [vmem:[#allocation5 + $0x70] sm:$0xff]  ;;  %v124_v43 = vld [vmem:[#allocation5 + $0x78] sm:$0xff]  ;;  %v605_v58 = vshrl.u32 %v47_v57, 7  ;;  %s327_s19 = sshll.u32 %s501_s18, 4  ;;  %s328_s19 = int_to_ptr.vmem [resolvable:$true] %s327_s19 }
  0x2d   :  { %382 = vmatprep.subr.bf16.mxu1 %v497_v0  ;;  %340 = vmatprep.mubr.msk.f32.mxu0 %vm104_vm1, %v76_v19  ;;  %v355_v32 = vpack.c.bf16 %v116_v31, %v115_v30  ;;  %v358_v35 = vpack.c.bf16 %v118_v34, %v117_v33  ;;  %v361_v38 = vpack.c.bf16 %v120_v37, %v119_v36  ;;  %v125_v45 = vld [vmem:[#allocation5 + $0x80] sm:$0xff]  ;;  %v126_v46 = vld [vmem:[#allocation5 + $0x88] sm:$0xff]  ;;  %v127_v48 = vld [vmem:[#allocation5 + $0x90] sm:$0xff]  ;;  %v66_v60 = vsel %vm54_vm2, 0.0, %v55_v17  ;;  %p470_p3 = scmp.lt.s32.totalorder %s328_s19, %s328_s19 }
  0x2e   :  { %342 = vmatprep.mubr.msk.f32.mxu1 %vm104_vm1, %v80_v22  ;;  %v364_v41 = vpack.c.bf16 %v122_v40, %v121_v39  ;;  %v367_v44 = vpack.c.bf16 %v124_v43, %v123_v42  ;;  %v370_v47 = vpack.c.bf16 %v126_v46, %v125_v45  ;;  %v128_v49 = vld [vmem:[#allocation5 + $0x98] sm:$0xff]  ;;  %v129_v51 = vld [vmem:[#allocation5 + $0xa0] sm:$0xff]  ;;  %v130_v52 = vld [vmem:[#allocation5 + $0xa8] sm:$0xff]  ;;  %v49_v59 = vadd.s32 8, %v605_v58 }
  0x2f   :  { %350 = vmatpush1.bf16.msra.mxu0 %v349_v21  ;;  %394 = vmatpush1.bf16.msra.mxu1 %v349_v21  ;;  %v373_v50 = vpack.c.bf16 %v128_v49, %v127_v48  ;;  %v376_v53 = vpack.c.bf16 %v130_v52, %v129_v51  ;;  %v131_v54 = vld [vmem:[#allocation5 + $0xb0] sm:$0xff]  ;;  %v132_v55 = vld [vmem:[#allocation5 + $0xb8] sm:$0xff]  ;;  %vm67_vm3 = vcmp.lt.s32.totalorder %v605_v58, 1 }
  0x30   :  { %351 = vmatprep.subr.bf16.mxu0 %v497_v0  ;;  %383 = vmatprep.subr.bf16.mxu1 %v497_v0  ;;  %v379_v56 = vpack.c.bf16 %v132_v55, %v131_v54  ;;  %vm87_vm4 = vcmp.ge.s32.totalorder %v49_v59, 15  ;;  %v69_v61 = vsel %vm67_vm3, 0.0, %v66_v60  ;;  %v71_v3 = vsel %vm67_vm3, 0.0, %v574_v26  ;;  %v274_v55 = vld [vmem:[%s672_s2] sm:$0x1] }
  0x31   :  { %v89_v63 = vsel %vm87_vm4, 0.0, %v563_v20  ;;  %v91_v6 = vsel %vm87_vm4, 0.0, %v577_v27  ;;  %v288_v59 = vsub.s32 1, %v605_v58 }
  0x33   :  { %353 = vmatpush1.bf16.msra.mxu0 %v352_v29  ;;  %395 = vmatpush1.bf16.msra.mxu1 %v352_v29 }
  0x34   :  { %354 = vmatprep.subr.bf16.mxu0 %v497_v0  ;;  %384 = vmatprep.subr.bf16.mxu1 %v497_v0 }
  0x37   :  { %356 = vmatpush1.bf16.msra.mxu0 %v355_v32  ;;  %396 = vmatpush1.bf16.msra.mxu1 %v355_v32 }
  0x38   :  { %357 = vmatprep.subr.bf16.mxu0 %v497_v0  ;;  %385 = vmatprep.subr.bf16.mxu1 %v497_v0 }
  0x3b   :  { %359 = vmatpush1.bf16.msra.mxu0 %v358_v35  ;;  %397 = vmatpush1.bf16.msra.mxu1 %v358_v35 }
  0x3c   :  { %360 = vmatprep.subr.bf16.mxu0 %v497_v0  ;;  %386 = vmatprep.subr.bf16.mxu1 %v497_v0 }
  0x3f   :  { %362 = vmatpush1.bf16.msra.mxu0 %v361_v38  ;;  %398 = vmatpush1.bf16.msra.mxu1 %v361_v38 }
  0x40   :  { %363 = vmatprep.subr.bf16.mxu0 %v497_v0  ;;  %387 = vmatprep.subr.bf16.mxu1 %v497_v0 }
  0x43   :  { %365 = vmatpush1.bf16.msra.mxu0 %v364_v41  ;;  %399 = vmatpush1.bf16.msra.mxu1 %v364_v41 }
  0x44   :  { %366 = vmatprep.subr.bf16.mxu0 %v497_v0  ;;  %388 = vmatprep.subr.bf16.mxu1 %v497_v0 }
  0x47   :  { %368 = vmatpush1.bf16.msra.mxu0 %v367_v44  ;;  %400 = vmatpush1.bf16.msra.mxu1 %v367_v44 }
  0x48   :  { %369 = vmatprep.subr.bf16.mxu0 %v497_v0  ;;  %389 = vmatprep.subr.bf16.mxu1 %v497_v0 }
  0x4b   :  { %371 = vmatpush1.bf16.msra.mxu0 %v370_v47  ;;  %401 = vmatpush1.bf16.msra.mxu1 %v370_v47 }
  0x4c   :  { %372 = vmatprep.subr.bf16.mxu0 %v497_v0  ;;  %390 = vmatprep.subr.bf16.mxu1 %v497_v0 }
  0x4f   :  { %374 = vmatpush1.bf16.msra.mxu0 %v373_v50  ;;  %402 = vmatpush1.bf16.msra.mxu1 %v373_v50 }
  0x50   :  { %375 = vmatprep.subr.bf16.mxu0 %v497_v0  ;;  %391 = vmatprep.subr.bf16.mxu1 %v497_v0 }
  0x53   :  { %377 = vmatpush1.bf16.msra.mxu0 %v376_v53  ;;  %403 = vmatpush1.bf16.msra.mxu1 %v376_v53 }
  0x54   :  { %378 = vmatprep.subr.bf16.mxu0 %v497_v0  ;;  %392 = vmatprep.subr.bf16.mxu1 %v497_v0 }
  0x57   :  { %380 = vmatpush1.bf16.msra.mxu0 %v379_v56  ;;  %404 = vmatpush1.bf16.msra.mxu1 %v379_v56  ;;  %v278_v56 = vrot.slane %v274_v55, 7 }
  0x9a   :  { %v93_v62 = vpop.permute.xlu0 %92  ;;  %v99_v1 = vpop.permute.xlu1 %98 }
  0x9b   :  { %v105_v0 = vsel %vm104_vm1, %v69_v61, %v93_v62  ;;  %v108_v9 = vsel %vm104_vm1, %v583_v28, %v99_v1  ;;  %v275_v62 = vld [vmem:[%s672_s2 + $0x1] sm:$0x1] }
  0x9c   :  { %210 = vmatmul.mubr.f32.vlgmr.msra.gmra.mrb[0].mxu0 %v105_v0  ;;  %v296_v0 = vsub.s32 0, %v605_v58 }
  0x9d   :  { %341 = vmatprep.mubr.msk.f32.mxu0 %vm104_vm1, %v89_v63 }
  0x9e   :  { %v416_v2 = vpop.permute.xlu0 %415 }
  0x9f   :  { %v418_v4 = vunpack.i.h.bf16 %v416_v2  ;;  %v417_v5 = vunpack.i.l.bf16 %v416_v2 }
  0xa1   :  { %v106_v7 = vsel %vm104_vm1, %v571_v25, %v417_v5  ;;  %v107_v8 = vsel %vm104_vm1, %v71_v3, %v418_v4 }
  0xa2   :  { %215 = vmatmul.mubr.f32.gmra.mrb[2].mxu0 %v106_v7  ;;  %220 = vmatmul.mubr.f32.vlgmr.msra.gmra.mrb[0].mxu1 %v107_v8  ;;  %v344_v8 = vld [vmem:[%s672_s2 + $0x2] ss:$0 sm:$0xff]  ;;  %s465_s2 = scalar_lea.vmem %s328_s19, 512 }
  0xa3   :  { %343 = vmatprep.mubr.msk.f32.mxu1 %vm104_vm1, %v91_v6  ;;  %p466_p2 = scmp.ne.s32.totalorder %s328_s19, %s465_s2  ;;  %p471_p4 = scmp.lt.s32.totalorder %s465_s2, %s465_s2 }
  0xa5   :  { %p472_p5 = por %p471_p4, %p470_p3 }
  0xa6   :  { %225 = vmatmul.mubr.f32.gmra.mrb[2].mxu1 %v108_v9 }
  0xa7   :  { %p473_p6 = pnand %p472_p5, %p466_p2 }
 0x16f   :  { %v623_v10 = vpop.f32.mrb[0].mxu0 }
 0x170   :  { %v213_v11 = vpop.f32.mrb[1].mxu0  ;;  %v239_v14 = vmul.f32 %v623_v10, %v623_v10 }
 0x175   :  { %v625_v12 = vpop.f32.mrb[2].mxu0  ;;  %v627_v13 = vpop.f32.mrb[0].mxu1 }
 0x176   :  { %v230_v15 = vadd.f32 %v625_v12, %v623_v10  ;;  %v240_v16 = vmul.f32 %v625_v12, %v625_v12  ;;  %v218_v17 = vpop.f32.mrb[3].mxu0  ;;  %v223_v18 = vpop.f32.mrb[1].mxu1  ;;  %v241_v21 = vmul.f32 %v627_v13, %v627_v13 }
 0x178   :  { %v243_v19 = vadd.f32 %v240_v16, %v239_v14  ;;  %v231_v20 = vadd.f32 %v230_v15, %v627_v13 }
 0x179   :  { %v226_v22 = vpop.f32.mrb[2].mxu1 }
 0x17a   :  { %v244_v23 = vadd.f32 %v243_v19, %v241_v21  ;;  %v232_v24 = vadd.f32 %v231_v20, %v226_v22  ;;  %v242_v25 = vmul.f32 %v226_v22, %v226_v22  ;;  %v228_v26 = vpop.f32.mrb[3].mxu1 }
 0x17c   :  { %v233_v27 = vrot.slane %v232_v24, 4  ;;  %v245_v28 = vadd.f32 %v244_v23, %v242_v25 }
 0x17e   :  { %v234_v29 = vadd.f32 %v233_v27, %v232_v24  ;;  %v246_v30 = vrot.slane %v245_v28, 4 }
 0x180   :  { %v235_v31 = vrot.slane %v234_v29, 2  ;;  %v247_v32 = vadd.f32 %v246_v30, %v245_v28 }
 0x182   :  { %v236_v33 = vadd.f32 %v235_v31, %v234_v29  ;;  %v248_v34 = vrot.slane %v247_v32, 2 }
 0x184   :  { %v237_v35 = vrot.slane %v236_v33, 1  ;;  %v249_v36 = vadd.f32 %v248_v34, %v247_v32 }
 0x186   :  { %v250_v37 = vrot.slane %v249_v36, 1  ;;  %v238_v38 = vadd.f32 %v237_v35, %v236_v33 }
 0x188   :  { %v251_v39 = vadd.f32 %v250_v37, %v249_v36 }
 0x18a   :  { %v252_v40 = vsel %vm54_vm2, %v238_v38, %v251_v39 }
 0x18b   :  { %253 = vrot.lane.b32.xlu1 %v252_v40, %s495_s23 }
 0x1fd   :  { %v254_v41 = vpop.permute.xlu1 %253 }
 0x1fe   :  { %v255_v42 = vadd.f32 %v254_v41, %v252_v40 }
 0x200   :  { %256 = vrot.lane.b32.xlu0 %v255_v42, %s499_s1 }
 0x272   :  { %v257_v43 = vpop.permute.xlu0 %256 }
 0x273   :  { %v258_v44 = vadd.f32 %v257_v43, %v255_v42 }
 0x275   :  { %259 = vrot.lane.b32.xlu1 %v258_v44, %s500_s11 }
 0x2e7   :  { %v260_v45 = vpop.permute.xlu1 %259 }
 0x2e8   :  { %v261_v46 = vadd.f32 %v260_v45, %v258_v44 }
 0x2ea   :  { %262 = vrot.lane.b32.xlu0 %v261_v46, %s498_s10 }
 0x35c   :  { %v263_v47 = vpop.permute.xlu0 %262 }
 0x35d   :  { %v264_v48 = vadd.f32 %v263_v47, %v261_v46 }
 0x35f   :  { %v265_v49 = vmul.f32 0.001953125, %v264_v48 }
 0x361   :  { %v266_v50 = vmul.f32 %v265_v49, %v265_v49 }
 0x363   :  { %v268_v51 = vrot.slane %v266_v50, 7 }
 0x365   :  { %v270_v52 = vsub.f32 %v265_v49, %v268_v51 }
 0x367   :  { %v271_v53 = vmax.f32 %v270_v52, 0.0 }
 0x369   :  { %v272_v54 = vadd.f32 0.001, %v271_v53 }
 0x36b   :  { %419 = vrsqrt.f32 %v272_v54 }
 0x375   :  { %v420_v57 = vpop.eup %419 }
 0x376   :  { %v280_v60 = vmul.f32 %v420_v57, %v278_v56 }
 0x378   :  { %v282_v61 = vrot.slane %v280_v60, 1  ;;  %v289_v63 = vrot.slane %v280_v60, %v288_v59 }
 0x37a   :  { %v284_v2 = vmul.f32 %v282_v61, %v265_v49  ;;  %v290_v4 = vmul.f32 %v289_v63, %v623_v10  ;;  %v291_v1 = vmul.f32 %v289_v63, %v625_v12  ;;  %v292_v6 = vmul.f32 %v289_v63, %v627_v13 }
 0x37b   :  { %v293_v7 = vmul.f32 %v289_v63, %v226_v22 }
 0x37c   :  { %v285_v3 = vsub.f32 %v275_v62, %v284_v2 }
 0x37e   :  { %v297_v5 = vrot.slane %v285_v3, %v296_v0 }
 0x380   :  { %v298_v9 = vadd.f32 %v297_v5, %v290_v4  ;;  %v299_v11 = vadd.f32 %v297_v5, %v291_v1  ;;  %v300_v14 = vadd.f32 %v297_v5, %v292_v6  ;;  %v301_v15 = vadd.f32 %v297_v5, %v293_v7 }
 0x382   :  { %vm302_vm5 = vcmp.gt.f32.partialorder %v298_v9, 0.0  ;;  %vm303_vm6 = vcmp.gt.f32.partialorder %v299_v11, 0.0  ;;  %vm304_vm7 = vcmp.gt.f32.partialorder %v300_v14, 0.0  ;;  %vm305_vm8 = vcmp.gt.f32.partialorder %v301_v15, 0.0 }
 0x383   :  { %v310_v58 = vmul.f32 %v344_v8, %v298_v9  ;;  %v311_v10 = vmul.f32 %v344_v8, %v299_v11  ;;  %v312_v12 = vmul.f32 %v344_v8, %v300_v14  ;;  %v313_v16 = vmul.f32 %v344_v8, %v301_v15 }
 0x385   :  { %v314_v13 = vsel %vm302_vm5, %v298_v9, %v310_v58  ;;  %v315_v17 = vsel %vm303_vm6, %v299_v11, %v311_v10  ;;  %v316_v18 = vsel %vm304_vm7, %v300_v14, %v312_v12  ;;  %v317_v19 = vsel %vm305_vm8, %v301_v15, %v313_v16 }
 0x386   :  { %318 = vst [vmem:[#allocation7] sm:$0xff] %v314_v13  ;;  %319 = vst [vmem:[#allocation7 + $0x8] sm:$0xff] %v315_v17 }
 0x387   :  { %320 = vst [vmem:[#allocation7 + $0x10] sm:$0xff] %v316_v18  ;;  %321 = vst [vmem:[#allocation7 + $0x18] sm:$0xff] %v317_v19 }
 0x388   :  { %476 = shalt.err (!%p473_p6)
}
 0x389   :  { %s477_s24 = scalar_lea.hbm %s673_s3, 512 }
 0x38a   :  { %p478_p7 = scmp.ne.s32.totalorder %s673_s3, %s477_s24  ;;  %p481_p8 = scmp.lt.u32.totalorder %s477_s24, %s673_s3 }
 0x38c   :  { %p483_p9 = pnand %p481_p8, %p478_p7 }
 0x38e   :  { %486 = shalt.err (!%p483_p9)
}
 0x38f   :  { %333 = dma.vmem_to_hbm [thread:$0]  %s328_s19, 512, %s673_s3, [#allocation4], %s494_s22, %s494_s22, %s495_s23  }
 0x390   :  { %491 = dma.done.wait [#allocation4], 512  }
 0x391   :  { %492 = vsyncadd [#allocation4], 4294966784 }
 0x392   :  { %337 = vsyncpa [#allocation3], 1 }
 0x393   :  { %338 = vsyncpa [#allocation6], 1 }
 0x394   :  { %339 = vsyncpa [#allocation4], 1 }

</bundles_post_ra>
